<compile_context>
chip_gen: v5e
topology: v5e:2x2
jax: 0.10.0
libtpu: 0.0.40
codegen_flags: <defaults>
</compile_context>

<pallas_src>
import functools

import jax
import jax.numpy as jnp
import numpy as np
from jax.experimental import pallas as pl
from jax.experimental.pallas import tpu as pltpu

OUT_FEATURES = 2      # MLP_1 projects to 2 logits
NEG_SLOPE = 0.01      # F.leaky_relu default negative_slope


def mlp1_kernel(x_ref, w_ref, b_ref, out_ref, *, negative_slope):
    x = x_ref[...]                                   # (tm, F)
    w = w_ref[...]                                   # (2, F)
    b = b_ref[...]                                   # (2, 1)  f32

    # Logits in transposed orientation: (2, tm) = w @ x^T  (feature axis
    # contracted on both operands -> NT matmul on the MXU).
    logits = jax.lax.dot_general(
        w, x,
        dimension_numbers=(((1,), (1,)), ((), ())),
        preferred_element_type=jnp.float32,
    ) + b                                            # (2, tm) f32

    # LeakyReLU.
    act = jnp.where(logits > 0, logits, negative_slope * logits)

    # Exact 2-class softmax over the class axis (axis 0 here):
    #   softmax([a, b]) = [sigmoid(a - b), sigmoid(b - a)] = [p0, 1 - p0]
    d = act[0:1, :] - act[1:2, :]                    # (1, tm)
    p0 = jax.nn.sigmoid(d)
    out_ref[0:1, :] = p0
    out_ref[1:2, :] = 1.0 - p0


def _choose_tm(batch, *, max_tm=1024):
    """Row tile (multiple of 128 -> lane-dense transposed stores).

    Take the biggest tile up to max_tm, but keep >= 2 grid steps whenever the
    batch allows it so the 'parallel' grid axis can be split across v7x's two
    TensorCores (on v5e/v6e a longer grid just pipelines).
    """
    if batch <= 128:
        return 128                      # single tiny step; nothing to split
    tm = 128
    while tm * 2 <= max_tm and pl.cdiv(batch, tm * 2) >= 2:
        tm *= 2
    return tm


@functools.partial(jax.jit,
                   static_argnames=("negative_slope", "compute_dtype", "max_tm"))
def mlp1_forward(mlp_in, weight, bias, *, negative_slope=NEG_SLOPE,
                 compute_dtype=jnp.float32, max_tm=1024):
    """softmax(leaky_relu(mlp_in @ weight.T + bias), dim=1).

    mlp_in : (B, n_mlp)
    weight : (2, n_mlp)   (PyTorch Linear layout)
    bias   : (2,)
    returns: (B, 2) float32

    compute_dtype=jnp.bfloat16 halves the dominant HBM read of x (useful on
    v6e/v7x for large B) at a small accuracy cost; accumulation stays f32.
    """
    b_rows, f = mlp_in.shape
    out_f = weight.shape[0]
    assert out_f == OUT_FEATURES, "kernel is specialized to the 2-class head"

    tm = _choose_tm(b_rows, max_tm=max_tm)
    n_blocks = pl.cdiv(b_rows, tm)      # ragged last block handled by Pallas
    b_pad = n_blocks * tm

    # Trivial per-call prep (casts / reshape only); fused under this jit.
    x = mlp_in.astype(compute_dtype)
    w = weight.astype(compute_dtype)                       # (2, F)
    b2 = bias.astype(jnp.float32).reshape(out_f, 1)        # (2, 1)

    out_t = pl.pallas_call(
        functools.partial(mlp1_kernel, negative_slope=negative_slope),
        out_shape=jax.ShapeDtypeStruct((out_f, b_pad), jnp.float32),
        grid=(n_blocks,),
        in_specs=[
            pl.BlockSpec((tm, f), lambda i: (i, 0)),        # row tile of x
            pl.BlockSpec((out_f, f), lambda i: (0, 0)),     # whole weight (2, F)
            pl.BlockSpec((out_f, 1), lambda i: (0, 0)),     # bias (2, 1)
        ],
        out_specs=pl.BlockSpec((out_f, tm), lambda i: (0, i)),  # lane-dense (2, tm)
        compiler_params=pltpu.CompilerParams(
            dimension_semantics=("parallel",)),
    )(x, w, b2)

    # Drop padded columns (garbage from the ragged block lands only here) and
    # return in the module's natural (B, 2) layout.
    return out_t[:, :b_rows].T


if __name__ == "__main__":
    B, N_MLP = 256, 32   # 2 grid steps of tm=128 -> both v7x TensorCores get work

    key = jax.random.PRNGKey(0)
    kx, kw, kb = jax.random.split(key, 3)

    mlp_in = jax.random.normal(kx, (B, N_MLP), jnp.float32)
    # torch.nn.Linear default init: U(-1/sqrt(fan_in), 1/sqrt(fan_in))
    bound = 1.0 / float(np.sqrt(N_MLP))
    weight = jax.random.uniform(kw, (OUT_FEATURES, N_MLP), jnp.float32, -bound, bound)
    bias = jax.random.uniform(kb, (OUT_FEATURES,), jnp.float32, -bound, bound)

    out = mlp1_forward(mlp_in, weight, bias)
    out = jax.block_until_ready(out)

    # Pure-JAX reference of the PyTorch forward.
    logits = mlp_in @ weight.T + bias
    act = jnp.where(logits > 0, logits, NEG_SLOPE * logits)
    ref = jax.nn.softmax(act, axis=1)

    assert out.shape == (B, OUT_FEATURES)
    np.testing.assert_allclose(np.asarray(out), np.asarray(ref), atol=1e-4, rtol=1e-4)
    print("KERNEL_OK")
</pallas_src>

<mosaic_0001>
module attributes {stable_mosaic.version = 11 : i64} {
  func.func @mlp1_kernel(%arg0: i32, %arg1: memref<128x32xf32, #tpu.memory_space<vmem>>, %arg2: memref<2x32xf32, #tpu.memory_space<vmem>>, %arg3: memref<2x1xf32, #tpu.memory_space<vmem>>, %arg4: memref<2x128xf32, #tpu.memory_space<vmem>>) attributes {dimension_semantics = [#tpu.dimension_semantics<parallel>], iteration_bounds = array<i64: 2>, scalar_prefetch = 0 : i64, scratch_operands = 0 : i64, tpu.core_type = #tpu.core_type<tc>, window_params = [{transform_indices = @transform_0, window_bounds = array<i64: 128, 32>}, {pipeline_mode = #tpu.pipeline_mode<synchronous>, transform_indices = @transform_1, window_bounds = array<i64: 2, 32>}, {pipeline_mode = #tpu.pipeline_mode<synchronous>, transform_indices = @transform_2, window_bounds = array<i64: 2, 1>}, {transform_indices = @transform_3, window_bounds = array<i64: 2, 128>}]} {
    %c0 = arith.constant 0 : index
    %c0_0 = arith.constant 0 : index
    %0 = vector.load %arg1[%c0, %c0_0] : memref<128x32xf32, #tpu.memory_space<vmem>>, vector<128x32xf32>
    %c0_1 = arith.constant 0 : index
    %c0_2 = arith.constant 0 : index
    %1 = vector.load %arg2[%c0_1, %c0_2] : memref<2x32xf32, #tpu.memory_space<vmem>>, vector<2x32xf32>
    %c0_3 = arith.constant 0 : index
    %c0_4 = arith.constant 0 : index
    %2 = vector.load %arg3[%c0_3, %c0_4] : memref<2x1xf32, #tpu.memory_space<vmem>>, vector<2x1xf32>
    %cst = arith.constant dense<0.000000e+00> : vector<2x128xf32>
    %3 = tpu.matmul %1, %0, %cst {dimension_numbers = #tpu.dot_dimension_numbers<[1], [1], [0], [0], [0, 0, 1, 0], [], []>} : vector<2x32xf32>, vector<128x32xf32>, vector<2x128xf32> -> vector<2x128xf32>
    %4 = vector.broadcast %2 : vector<2x1xf32> to vector<2x128xf32>
    %5 = arith.addf %3, %4 : vector<2x128xf32>
    %cst_5 = arith.constant 0.000000e+00 : f32
    %6 = vector.broadcast %cst_5 : f32 to vector<2x128xf32>
    %7 = arith.cmpf ogt, %5, %6 : vector<2x128xf32>
    %cst_6 = arith.constant 0.00999999977 : f32
    %8 = vector.broadcast %cst_6 : f32 to vector<2x128xf32>
    %9 = arith.mulf %8, %5 : vector<2x128xf32>
    %10 = arith.select %7, %5, %9 : vector<2x128xi1>, vector<2x128xf32>
    %11 = vector.extract_strided_slice %10 {offsets = [0, 0], sizes = [1, 128], strides = [1, 1]} : vector<2x128xf32> to vector<1x128xf32>
    %12 = vector.extract_strided_slice %10 {offsets = [1, 0], sizes = [1, 128], strides = [1, 1]} : vector<2x128xf32> to vector<1x128xf32>
    %13 = arith.subf %11, %12 : vector<1x128xf32>
    %14 = arith.negf %13 : vector<1x128xf32>
    %15 = math.exp %14 : vector<1x128xf32>
    %cst_7 = arith.constant 1.000000e+00 : f32
    %16 = vector.broadcast %cst_7 : f32 to vector<1x128xf32>
    %17 = arith.addf %16, %15 : vector<1x128xf32>
    %18 = arith.divf %16, %17 : vector<1x128xf32>
    %c0_8 = arith.constant 0 : index
    %c0_9 = arith.constant 0 : index
    %19 = vector.load %arg4[%c0_8, %c0_9] : memref<2x128xf32, #tpu.memory_space<vmem>>, vector<1x128xf32>
    tpu.vector_store %arg4[%c0_8, %c0_9], %18 {strides = array<i32>} : memref<2x128xf32, #tpu.memory_space<vmem>>, vector<1x128xf32>,
    %cst_10 = arith.constant 1.000000e+00 : f32
    %20 = vector.broadcast %cst_10 : f32 to vector<1x128xf32>
    %21 = arith.subf %20, %18 : vector<1x128xf32>
    %c1 = arith.constant 1 : index
    %c0_11 = arith.constant 0 : index
    %22 = vector.load %arg4[%c1, %c0_11] : memref<2x128xf32, #tpu.memory_space<vmem>>, vector<1x128xf32>
    tpu.vector_store %arg4[%c1, %c0_11], %21 {strides = array<i32>} : memref<2x128xf32, #tpu.memory_space<vmem>>, vector<1x128xf32>,
    return
  }
  func.func @transform_0(%arg0: i32) -> (i32, i32) {
    %c0_i32 = arith.constant 0 : i32
    %c0_i32_0 = arith.constant 0 : i32
    return %arg0, %c0_i32 : i32, i32
  }
  func.func @transform_1(%arg0: i32) -> (i32, i32) {
    %c0_i32 = arith.constant 0 : i32
    %c0_i32_0 = arith.constant 0 : i32
    %c0_i32_1 = arith.constant 0 : i32
    return %c0_i32, %c0_i32_0 : i32, i32
  }
  func.func @transform_2(%arg0: i32) -> (i32, i32) {
    %c0_i32 = arith.constant 0 : i32
    %c0_i32_0 = arith.constant 0 : i32
    %c0_i32_1 = arith.constant 0 : i32
    return %c0_i32, %c0_i32_0 : i32, i32
  }
  func.func @transform_3(%arg0: i32) -> (i32, i32) {
    %c0_i32 = arith.constant 0 : i32
    %c0_i32_0 = arith.constant 0 : i32
    return %c0_i32, %arg0 : i32, i32
  }
}

</mosaic_0001>

<bundles_post_ra>
// kernel: mlp1_forward.1
= control target key start
LH: loop header
LB: loop body
LE: loop exit
PB: predicated region body
PF: predicated region fallthrough
CT: control target
= control target key end

     0   :  { %8 = vsyncpa [#allocation3], 0  ;;  %s654_s0 = inlined_call_operand.vmem [shape: f32[256,32], index: 0, kind: input, shape index: {}]   ;;  %s655_s1 = inlined_call_operand.vmem [shape: f32[2,32], index: 1, kind: input, shape index: {}]   ;;  %s656_s2 = inlined_call_operand.vmem [shape: f32[2,1], index: 2, kind: input, shape index: {}]   ;;  %s657_s3 = inlined_call_operand.hbm [shape: f32[2,256], index: 3, kind: output, shape index: {}]  }
   0x1   :  { %10 = vsyncpa [#allocation3 + $0x1], 0  ;;  %s529_s12 = smov 0   ;;  %s531_s13 = smov 0  }
   0x2   :  { %s533_s14 = smov 0   ;;  %s535_s15 = smov 0  }
   0x3 LB: > { %s550_s16 = sadd.s32 4294967295, %s506_s15   ;;  %s370_s17 = sadd.s32 4294967294, %s506_s15   ;;  %s506_s15 = sphi %s535_s15, %s663_s15   ;;  %s502_s14 = sphi %s533_s14, %s662_s14   ;;  %s498_s13 = sphi %s531_s13, %s661_s13   ;;  %s494_s12 = sphi %s529_s12, %s660_s12  }
   0x4   : > { %s554_s18 = sadd.s32 1, %s506_s15   ;;  %s91_s19 = sadd.s32 1, %s502_s14 }
   0x5   : > { %s88_s20 = ssub.s32 %s506_s15, %s554_s18  ;;  %p101_p0 = scmp.ne.s32.totalorder %s502_s14, %s498_s13 }
   0x6   : > { %p89_p1 = scmp.eq.s32.totalorder %s88_s20, 0  ;;  %p102_p2 = scmp.eq.s32.totalorder %s550_s16, 1 }
   0x7   : > { %p107_p3 = scmp.ne.s32.totalorder %s498_s13, %s494_s12  ;;  %p108_p4 = scmp.eq.s32.totalorder %s370_s17, 1 }
   0x8   : > { %s565_s21 = scalar_select %p89_p1, %s502_s14, %s91_s19  }
   0x9   : > { %p567_p5 = por %p102_p2, %p101_p0  ;;  %p571_p6 = por %p108_p4, %p107_p3 }
   0xa   : > { %p373_p7 = scmp.ge.s32.totalorder %s506_s15, 1  ;;  %p141_p8 = scmp.lt.s32.totalorder %s506_s15, 3 }
   0xc   : > { %p142_p9 = pnand %p373_p7, %p141_p8 }
   0xd   : > { %s375_s24 = sshll.u32 (!%p142_p9), %s550_s16, 4  ;;  %s162_s6 = sand.u32 (!%p142_p9), 1, %s498_s13  }
   0xe   : > { %145 = sbr.rel (%p142_p9) target bundleno = 254 (0xfe), region = 32  ;;  %p166_p10 = scmp.lt.s32.totalorder (!%p142_p9), %s375_s24, 31 }
   0xf   : > { %s374_s7 = sshll.u32 (!%p142_p9), %s162_s6, 1  ;;  %s396_s8 = sshll.u32 (!%p142_p9), %s550_s16, 1 }
  0x10   : > { %s306_s11 = scalar_lea.hbm (!%p142_p9), %s657_s3, %s396_s8  ;;  %s164_s17 = scalar_lea.vmem (!%p142_p9), [#allocation2], %s374_s7 }
  0x11   : > { %s308_s19 = sshll.u32 (!%p142_p9), %s164_s17, 4  ;;  %s310_s20 = sshll.u32 (!%p142_p9), %s306_s11, 4  ;;  %s309_s19 = int_to_ptr.vmem [resolvable:$true] %s308_s19  ;;  %s311_s20 = int_to_ptr.hbm [resolvable:$true] %s310_s20 }
  0x12   : > { %s296_s16 = scalar_lea.sflag (!%p142_p9), [#allocation3], %s162_s6 }
  0x13   : > { %s665_s24 = smov (!%p166_p10, %s375_s24), 31  ;;  %vm194_vm0 = vcmask 261120   ;;  %v188_v9 = vld [vmem:[%s656_s2] sm:$0x3]  ;;  %v508_v10 = vmov 0  }
  0x14   : > { %s376_s25 = sshll.u32 %s665_s24, 3  ;;  %439 = vset.pattern.permute.xlu0 %v508_v10  ;;  %v187_v18 = vld [vmem:[%s655_s1] sm:$0x3]  ;;  %s458_s24 = sshra.s32 %s311_s20, 4  ;;  %s459_s24 = int_to_ptr.hbm [resolvable:$true] %s458_s24 }
  0x15   : > { %s581_s28 = scalar_lea.vmem %s654_s0, %s376_s25  ;;  %191 = vperm.xlu0 %439, %v188_v9   ;;  %s460_s25 = scalar_lea.hbm %s459_s24, 2 }
  0x16   : > { %v186_v0 = vld [vmem:[%s581_s28 + $0x78] sm:$0xff]  ;;  %v185_v1 = vld [vmem:[%s581_s28 + $0x70] sm:$0xff]  ;;  %v184_v2 = vld [vmem:[%s581_s28 + $0x68] sm:$0xff]  ;;  %p461_p11 = scmp.ne.s32.totalorder %s459_s24, %s460_s25  ;;  %p465_p0 = scmp.lt.s32.totalorder %s459_s24, %s657_s3 }
  0x17   : > { %377 = vmatpush.xpose.msk.msra.mxu0 %vm194_vm0, %v186_v0  ;;  %v183_v3 = vld [vmem:[%s581_s28 + $0x60] sm:$0xff]  ;;  %v182_v4 = vld [vmem:[%s581_s28 + $0x58] sm:$0xff]  ;;  %v181_v5 = vld [vmem:[%s581_s28 + $0x50] sm:$0xff] }
  0x18   : > { %v180_v6 = vld [vmem:[%s581_s28 + $0x48] sm:$0xff]  ;;  %v179_v7 = vld [vmem:[%s581_s28 + $0x40] sm:$0xff]  ;;  %v178_v8 = vld [vmem:[%s581_s28 + $0x38] sm:$0xff]  ;;  %p462_p12 = pnand %p461_p11, %p567_p5 }
  0x19   : > { %v177_v11 = vld [vmem:[%s581_s28 + $0x30] sm:$0xff]  ;;  %v176_v12 = vld [vmem:[%s581_s28 + $0x28] sm:$0xff]  ;;  %v175_v13 = vld [vmem:[%s581_s28 + $0x20] sm:$0xff] }
  0x1a   : > { %v174_v14 = vld [vmem:[%s581_s28 + $0x18] sm:$0xff]  ;;  %v173_v15 = vld [vmem:[%s581_s28 + $0x10] sm:$0xff]  ;;  %v172_v16 = vld [vmem:[%s581_s28 + $0x8] sm:$0xff]  ;;  %p463_p13 = pneg %p462_p12 }
  0x1b   : > { %378 = vmatpush.xpose.msk.msra.mxu0 %vm194_vm0, %v185_v1  ;;  %v171_v17 = vld [vmem:[%s581_s28] sm:$0xff]  ;;  %s464_s28 = scalar_lea.hbm %s657_s3, 4 }
  0x1c   : > { %p466_p1 = scmp.lt.s32.totalorder %s464_s28, %s460_s25 }
  0x1e   : > { %p467_p2 = por %p466_p1, %p465_p0 }
  0x1f   : > { %379 = vmatpush.xpose.msk.msra.mxu0 %vm194_vm0, %v184_v2 }
  0x20   : > { %p468_p3 = pnand %p467_p2, %p463_p13 }
  0x23   : > { %380 = vmatpush.xpose.msk.msra.mxu0 %vm194_vm0, %v183_v3 }
  0x27   : > { %381 = vmatpush.xpose.msk.msra.mxu0 %vm194_vm0, %v182_v4 }
  0x2b   : > { %382 = vmatpush.xpose.msk.msra.mxu0 %vm194_vm0, %v181_v5 }
  0x2f   : > { %383 = vmatpush.xpose.msk.msra.mxu0 %vm194_vm0, %v180_v6 }
  0x33   : > { %384 = vmatpush.xpose.msk.msra.mxu0 %vm194_vm0, %v179_v7 }
  0x37   : > { %385 = vmatpush.xpose.msk.msra.mxu0 %vm194_vm0, %v178_v8 }
  0x3b   : > { %386 = vmatpush.xpose.msk.msra.mxu0 %vm194_vm0, %v177_v11 }
  0x3f   : > { %387 = vmatpush.xpose.msk.msra.mxu0 %vm194_vm0, %v176_v12 }
  0x43   : > { %388 = vmatpush.xpose.msk.msra.mxu0 %vm194_vm0, %v175_v13 }
  0x47   : > { %389 = vmatpush.xpose.msk.msra.mxu0 %vm194_vm0, %v174_v14 }
  0x4b   : > { %390 = vmatpush.xpose.msk.msra.mxu0 %vm194_vm0, %v173_v15 }
  0x4f   : > { %391 = vmatpush.xpose.msk.msra.mxu0 %vm194_vm0, %v172_v16 }
  0x53   : > { %392 = vmatpush.xpose.msk.msra.mxu0 %vm194_vm0, %v171_v17 }
  0x56   : > { %393 = vmatmul.msk.f32.vlgmr.msra.gmra.mxu0 %vm194_vm0, %v187_v18 }
  0x87   : > { %v192_v19 = vpop.permute.xlu0 %191 }
  0xd3   : > { %v263_v20 = vpop.f32.mrf.mxu0 }
  0xd4   : > { %v264_v21 = vadd.f32 %v263_v20, %v192_v19 }
  0xd6   : > { %vm266_vm1 = vcmp.gt.f32.partialorder %v264_v21, 0.0  ;;  %v267_v22 = vmul.f32 0.01, %v264_v21 }
  0xd8   : > { %v268_v23 = vsel %vm266_vm1, %v264_v21, %v267_v22 }
  0xd9   : > { %v270_v24 = vrot.slane %v268_v23, 1 }
  0xdb   : > { %v272_v25 = vsub.f32 %v268_v23, %v270_v24 }
  0xdd   : > { %v394_v26 = vmul.f32 -1.442695, %v272_v25 }
  0xdf   : > { %440 = vpow2.f32 %v394_v26 }
  0xe5   : > { %v441_v27 = vpop.eup %440 }
  0xe6   : > { %v276_v28 = vadd.f32 1.0, %v441_v27 }
  0xe8   : > { %442 = vrcp.f32 %v276_v28  ;;  %v288_v32 = vand.u32 2147483648, %v276_v28  ;;  %v286_v34 = vand.u32 2147483647, %v276_v28  ;;  %vm282_vm3 = vweird.f32 %v276_v28 }
  0xea   : > { %v289_v36 = vor.u32 1.1754944e-38, %v288_v32  ;;  %vm287_vm5 = vcmp.eq.f32.partialorder %v286_v34, 8.507059e+37 }
  0xee   : > { %v443_v29 = vpop.eup %442 }
  0xef   : > { %v278_v30 = vmul.f32 %v443_v29, %v276_v28  ;;  %vm283_vm2 = vweird.f32 %v443_v29 }
  0xf0   : > { %vm284_vm4 = vmor %vm282_vm3, %vm283_vm2 }
  0xf1   : > { %v279_v31 = vsub.f32 1.0, %v278_v30 }
  0xf3   : > { %v280_v33 = vmul.f32 %v443_v29, %v279_v31 }
  0xf5   : > { %v281_v35 = vadd.f32 %v443_v29, %v280_v33 }
  0xf7   : > { %v285_v37 = vsel %vm284_vm4, %v443_v29, %v281_v35 }
  0xf8   : > { %v290_v38 = vsel %vm287_vm5, %v289_v36, %v285_v37 }
  0xf9   : > { %292 = vst [vmem:[%s164_s17] sm:$0x1] %v290_v38  ;;  %v293_v39 = vsub.f32 1.0, %v290_v38 }
  0xfb   : > { %294 = vst [vmem:[%s164_s17 + $0x1] sm:$0x1] %v293_v39 }
  0xfc   : > { %471 = shalt.err (!%p468_p3)
}
  0xfd   : > { %399 = dma.vmem_to_hbm [thread:$0]  (%p567_p5), %s309_s19, 32, %s311_s20, %s296_s16  }
  0xfe PF: > { %p405_p4 = scmp.ge.s32.totalorder %s506_s15, 2  ;;  %s322_s4 = sand.u32 1, %s494_s12  }
  0xff   : > { %s323_s5 = scalar_lea.sflag [#allocation3], %s322_s4 }
 0x100   : > { %p402_p7 = pnand %p405_p4, %p571_p6 }
 0x102   : > { %p403_p8 = pneg %p402_p7 }
 0x104   : > { %489 = dma.done.wait (%p403_p8), %s323_s5, 32  }
 0x105   : > { %491 = vsyncadd (%p403_p8), %s323_s5, 4294967264  ;;  %p13_p9 = scmp.ge.s32.totalorder %s554_s18, 4   ;;  %s660_s12 = smov %s498_s13 }
 0x106   : > { %s661_s13 = smov %s502_s14  ;;  %s662_s14 = smov %s565_s21 }
 0x107   : > { %s663_s15 = smov %s554_s18  ;;  %15 = sbr.rel (!%p13_p9) target bundleno = 3 (0x3), region = 67 }
 0x10c   :  { %329 = vsyncpa [#allocation3], 1 }
 0x10d   :  { %331 = vsyncpa [#allocation3 + $0x1], 1 }

</bundles_post_ra>
